<compile_context>
chip_gen: v6e
topology: v6e:2x2x1
jax: 0.10.0
libtpu: 0.0.40
codegen_flags: <defaults>
</compile_context>

<pallas_src>
import functools
import math

import jax
import jax.numpy as jnp
from jax import lax
from jax.experimental import pallas as pl
from jax.experimental.pallas import tpu as pltpu

_EPS = 1e-5
_INV_SQRT2 = 0.7071067811865476
_SQRT_2_OVER_PI = 0.7978845608028654


def _round_up(x, m):
    return (x + m - 1) // m * m


def _cdiv(a, b):
    return (a + b - 1) // b


def _conv_gelu_stats_kernel(p_ref, w_ref, y_ref, s_ref, ss_ref, *, tanh_gelu):
    # p_ref:  (TILE_M, K_pad)   bf16 im2col patch tile
    # w_ref:  (K_pad, OC_pad)   bf16 reshaped conv weights (resident, single-buffered)
    # y_ref:  (TILE_M, OC_pad)  bf16 conv+GELU activation tile (halved writeback)
    # s_ref:  (1, 1, OC_pad)    f32 per-tile channel sum
    # ss_ref: (1, 1, OC_pad)    f32 per-tile channel sum of squares
    y = jnp.dot(p_ref[...], w_ref[...], preferred_element_type=jnp.float32)
    if tanh_gelu:
        # Optional tanh approximation (EUP tanh, frees the VALU erf polynomial).
        g = 0.5 * y * (1.0 + jnp.tanh(_SQRT_2_OVER_PI * (y + 0.044715 * y * y * y)))
    else:
        # Exact GELU (PyTorch nn.GELU() default, approximate='none').
        g = 0.5 * y * (1.0 + lax.erf(y * _INV_SQRT2))
    y_ref[...] = g.astype(y_ref.dtype)
    # Stats stay f32; two separate stores (no concatenate / relayout).
    s_ref[...] = jnp.sum(g, axis=0, keepdims=True)[None]
    ss_ref[...] = jnp.sum(g * g, axis=0, keepdims=True)[None]


def _im2col_bf16(x, kh, kw, stride, padding):
    """x: (N, C, H, W) -> bf16 patches (N*OH*OW, C*KH*KW), matching PyTorch weight flattening.

    The bf16 cast happens BEFORE pad/stack/transpose so the whole slab (and its transpose)
    moves half the bytes (perf-review item)."""
    n, c, h, w = x.shape
    xb = x.astype(jnp.bfloat16)
    xp = jnp.pad(xb, ((0, 0), (0, 0), (padding, padding), (padding, padding)))
    oh = (h + 2 * padding - kh) // stride + 1
    ow = (w + 2 * padding - kw) // stride + 1
    cols = []
    for i in range(kh):
        for j in range(kw):
            cols.append(xp[:, :, i:i + stride * oh:stride, j:j + stride * ow:stride])
    p = jnp.stack(cols, axis=0)                    # (KH*KW, N, C, OH, OW)
    p = p.reshape(kh, kw, n, c, oh, ow)
    p = p.transpose(2, 4, 5, 3, 0, 1)              # (N, OH, OW, C, KH, KW)
    p = p.reshape(n * oh * ow, c * kh * kw)        # (M, K) bf16
    return p, oh, ow


def _vmem_capacity_bytes():
    # Generation query (v5e/v6e: 128 MiB, v7x: 64 MiB per TC). Conservative fallback.
    try:
        return int(pltpu.get_tpu_info().vmem_capacity_bytes)
    except Exception:
        return 64 << 20


def _pick_tiling(m, k_pad, oc_pad, tile_m):
    """Generation-aware M-tile and VMEM budget (perf-review items)."""
    vmem_cap = _vmem_capacity_bytes()

    if tile_m is None:
        # Bigger tiles on 128-MiB-VMEM chips (v5e/v6e), moderate on v7x (64 MiB).
        tile_m = 1024 if vmem_cap > (96 << 20) else 512
        # Keep the 1-D "parallel" grid at >= 2 steps so v7x megacore can split it.
        if m > 16:
            tile_m = min(tile_m, _round_up(_cdiv(m, 2), 8))
    tile_m = max(_round_up(tile_m, 8), 8)

    def need(t):
        return (2 * t * k_pad * 2        # patch tiles (bf16, double-buffered)
                + 2 * t * oc_pad * 2     # activation tiles (bf16, double-buffered)
                + k_pad * oc_pad * 2     # weights (bf16, single-buffered: Buffered(1))
                + 2 * 2 * oc_pad * 4)    # two stats outputs (double-buffered, tiny)

    # v7x: stay well under 64 MiB (Mosaic internal scratch needs headroom); v5e/v6e can go higher.
    cap = (40 << 20) if vmem_cap <= (64 << 20) else (96 << 20)
    while need(tile_m) > (cap * 7) // 10 and tile_m > 128:
        tile_m = max(_round_up(tile_m // 2, 8), 8)

    vmem_limit = int(min(max(need(tile_m) * 3 // 2 + (2 << 20), 16 << 20), cap))
    return tile_m, vmem_limit


@functools.partial(jax.jit, static_argnames=("stride", "padding", "tile_m", "tanh_gelu"))
def conv_gelu_bn(x, weight, gamma, beta, *, stride=1, padding=0, tile_m=None,
                 tanh_gelu=False):
    """Forward of the `Conv` module.

    x:      (N, C, H, W) float32, NCHW (PyTorch convention)
    weight: (OC, C, KH, KW) float32
    gamma, beta: (OC,) float32 (BatchNorm affine params)
    returns (N, OC, OH, OW) float32
    """
    n, c, h, w = x.shape
    oc, c_w, kh, kw = weight.shape
    assert c == c_w

    patches, oh, ow = _im2col_bf16(x, kh, kw, stride, padding)
    m, k = patches.shape

    # OC padded to 256 when it can use the full 256-wide MXU on v6e/v7x, 128 otherwise.
    oc_pad = _round_up(oc, 256) if oc > 128 else _round_up(oc, 128)
    k_pad = _round_up(k, 128)

    tile_m, vmem_limit = _pick_tiling(m, k_pad, oc_pad, tile_m)
    m_pad = _round_up(m, tile_m)
    num_tiles = m_pad // tile_m

    # Zero-pad to lane/tile-friendly shapes. Padded rows / channels stay exactly zero
    # through conv+GELU, so BN statistics (divided by true per-tile counts) are unaffected.
    patches_p = jnp.pad(patches, ((0, m_pad - m), (0, k_pad - k)))
    w_mat = jnp.pad(weight.astype(jnp.bfloat16).reshape(oc, k).T,
                    ((0, k_pad - k), (0, oc_pad - oc)))

    cparams = pltpu.CompilerParams(dimension_semantics=("parallel",),
                                   vmem_limit_bytes=vmem_limit)
    cost = pl.CostEstimate(
        flops=2 * m_pad * k_pad * oc_pad + 10 * m_pad * oc_pad,
        transcendentals=m_pad * oc_pad,
        bytes_accessed=(m_pad * k_pad * 2 + k_pad * oc_pad * 2
                        + m_pad * oc_pad * 2 + 2 * num_tiles * oc_pad * 4))

    kernel = functools.partial(_conv_gelu_stats_kernel, tanh_gelu=tanh_gelu)

    # Single hot Pallas pass: conv (MXU) + GELU + per-tile partial BN stats.
    y_pad, s_part, ss_part = pl.pallas_call(
        kernel,
        out_shape=(jax.ShapeDtypeStruct((m_pad, oc_pad), jnp.bfloat16),
                   jax.ShapeDtypeStruct((num_tiles, 1, oc_pad), jnp.float32),
                   jax.ShapeDtypeStruct((num_tiles, 1, oc_pad), jnp.float32)),
        grid=(num_tiles,),
        in_specs=[pl.BlockSpec((tile_m, k_pad), lambda i: (i, 0)),
                  pl.BlockSpec((k_pad, oc_pad), lambda i: (0, 0),
                               pipeline_mode=pl.Buffered(1))],   # resident weights, 1 buffer
        out_specs=(pl.BlockSpec((tile_m, oc_pad), lambda i: (i, 0)),
                   pl.BlockSpec((1, 1, oc_pad), lambda i: (i, 0, 0)),
                   pl.BlockSpec((1, 1, oc_pad), lambda i: (i, 0, 0))),
        compiler_params=cparams,
        cost_estimate=cost,
    )(patches_p, w_mat)

    # Finalize BN statistics with a Chan/Welford-style partial merge (f32, tiny per-channel
    # math hoisted out of the kernel). Padded rows contribute 0 to the sums and are not
    # counted; padded channels are sliced off below.
    m_f = jnp.float32(m)
    counts = jnp.clip(m - jnp.arange(num_tiles) * tile_m, 1, tile_m).astype(jnp.float32)[:, None]
    s_t = s_part[:, 0, :]
    ss_t = ss_part[:, 0, :]
    mean_t = s_t / counts
    m2_t = jnp.maximum(ss_t - s_t * mean_t, 0.0)
    mean = jnp.sum(s_t, axis=0) / m_f
    m2 = jnp.sum(m2_t + counts * jnp.square(mean_t - mean[None, :]), axis=0)
    var = jnp.maximum(m2 / m_f, 0.0)                 # biased variance (PyTorch fwd)
    inv_std = lax.rsqrt(var + _EPS)

    scale = gamma.astype(jnp.float32) * inv_std[:oc]
    shift = beta.astype(jnp.float32) - mean[:oc] * scale

    # Folded BN affine fused (by XLA, under this jit) with the slice / reshape / NCHW
    # transpose: one read of the bf16 activation, one write of the f32 output — the
    # previous separate Pallas apply pass + transpose round trip is gone.
    y_act = y_pad[:m, :oc].astype(jnp.float32)
    out = y_act * scale[None, :] + shift[None, :]
    out = out.reshape(n, oh, ow, oc).transpose(0, 3, 1, 2)
    return out


if __name__ == "__main__":
    # Small deterministic example: Conv(in_channels=4, out_channels=8, kernel_size=3,
    # stride=1, padding=1) on a (2, 4, 16, 16) input.
    key = jax.random.PRNGKey(0)
    kx, kwt = jax.random.split(key)

    N, C, H, W = 2, 4, 16, 16
    OC, K = 8, 3
    stride, padding = 1, 1

    x = jax.random.normal(kx, (N, C, H, W), dtype=jnp.float32)

    # Deterministic Conv2d weight init (PyTorch-style kaiming-uniform bound).
    fan_in = C * K * K
    bound = 1.0 / math.sqrt(fan_in)
    weight = jax.random.uniform(kwt, (OC, C, K, K), dtype=jnp.float32,
                                minval=-bound, maxval=bound)

    # BatchNorm2d default affine init: weight=1, bias=0.
    gamma = jnp.ones((OC,), dtype=jnp.float32)
    beta = jnp.zeros((OC,), dtype=jnp.float32)

    y = conv_gelu_bn(x, weight, gamma, beta, stride=stride, padding=padding)
    jax.block_until_ready(y)
    assert y.shape == (N, OC, H, W), y.shape
    assert bool(jnp.all(jnp.isfinite(y)))

    # Pure-JAX f32 reference (conv -> exact GELU -> training-mode BatchNorm).
    conv_ref = lax.conv_general_dilated(
        x, weight, window_strides=(stride, stride),
        padding=[(padding, padding), (padding, padding)],
        dimension_numbers=("NCHW", "OIHW", "NCHW"))
    g_ref = 0.5 * conv_ref * (1.0 + lax.erf(conv_ref * _INV_SQRT2))
    mean_ref = jnp.mean(g_ref, axis=(0, 2, 3), keepdims=True)
    var_ref = jnp.mean((g_ref - mean_ref) ** 2, axis=(0, 2, 3), keepdims=True)
    ref = ((g_ref - mean_ref) * lax.rsqrt(var_ref + _EPS)
           * gamma.reshape(1, -1, 1, 1) + beta.reshape(1, -1, 1, 1))
    err = float(jnp.max(jnp.abs(y - ref)))
    # Loose tolerance: the kernel path uses bf16 MXU operands and a bf16 intermediate.
    assert err < 0.2, f"max abs error vs reference too large: {err}"

    print("KERNEL_OK")
</pallas_src>

<mosaic_0001>
module attributes {stable_mosaic.version = 11 : i64} {
  func.func @_conv_gelu_stats_kernel(%arg0: i32, %arg1: memref<256x128xbf16, #tpu.memory_space<vmem>>, %arg2: memref<128x128xbf16, #tpu.memory_space<vmem>>, %arg3: memref<256x128xbf16, #tpu.memory_space<vmem>>, %arg4: memref<1x1x128xf32, #tpu.memory_space<vmem>>, %arg5: memref<1x1x128xf32, #tpu.memory_space<vmem>>) attributes {dimension_semantics = [#tpu.dimension_semantics<parallel>], iteration_bounds = array<i64: 2>, scalar_prefetch = 0 : i64, scratch_operands = 0 : i64, tpu.core_type = #tpu.core_type<tc>, window_params = [{transform_indices = @transform_0, window_bounds = array<i64: 256, 128>}, {pipeline_mode = #tpu.pipeline_mode<synchronous>, transform_indices = @transform_1, window_bounds = array<i64: 128, 128>}, {transform_indices = @transform_2, window_bounds = array<i64: 256, 128>}, {transform_indices = @transform_3, window_bounds = array<i64: 1, 1, 128>}, {transform_indices = @transform_4, window_bounds = array<i64: 1, 1, 128>}]} {
    %c0 = arith.constant 0 : index
    %c0_0 = arith.constant 0 : index
    %0 = vector.load %arg1[%c0, %c0_0] : memref<256x128xbf16, #tpu.memory_space<vmem>>, vector<256x128xbf16>
    %c0_1 = arith.constant 0 : index
    %c0_2 = arith.constant 0 : index
    %1 = vector.load %arg2[%c0_1, %c0_2] : memref<128x128xbf16, #tpu.memory_space<vmem>>, vector<128x128xbf16>
    %cst = arith.constant dense<0.000000e+00> : vector<256x128xf32>
    %2 = tpu.matmul %0, %1, %cst {dimension_numbers = #tpu.dot_dimension_numbers<[1], [0], [0], [1], [0, 0, 1, 1], [], []>} : vector<256x128xbf16>, vector<128x128xbf16>, vector<256x128xf32> -> vector<256x128xf32>
    %cst_3 = arith.constant 5.000000e-01 : f32
    %3 = vector.broadcast %cst_3 : f32 to vector<256x128xf32>
    %4 = arith.mulf %3, %2 : vector<256x128xf32>
    %cst_4 = arith.constant 0.707106769 : f32
    %5 = vector.broadcast %cst_4 : f32 to vector<256x128xf32>
    %6 = arith.mulf %2, %5 : vector<256x128xf32>
    %7 = math.erf %6 : vector<256x128xf32>
    %cst_5 = arith.constant 1.000000e+00 : f32
    %8 = vector.broadcast %cst_5 : f32 to vector<256x128xf32>
    %9 = arith.addf %8, %7 : vector<256x128xf32>
    %10 = arith.mulf %4, %9 : vector<256x128xf32>
    %11 = arith.truncf %10 : vector<256x128xf32> to vector<256x128xbf16>
    %c0_6 = arith.constant 0 : index
    %c0_7 = arith.constant 0 : index
    %12 = vector.load %arg3[%c0_6, %c0_7] : memref<256x128xbf16, #tpu.memory_space<vmem>>, vector<256x128xbf16>
    tpu.vector_store %arg3[%c0_6, %c0_7], %11 {strides = array<i32>} : memref<256x128xbf16, #tpu.memory_space<vmem>>, vector<256x128xbf16>,
    %cst_8 = arith.constant dense<0.000000e+00> : vector<128xf32>
    %13 = vector.multi_reduction <add>, %10, %cst_8 [0] : vector<256x128xf32> to vector<128xf32>
    %14 = vector.shape_cast %13 : vector<128xf32> to vector<1x128xf32>
    %15 = vector.shape_cast %14 : vector<1x128xf32> to vector<1x1x128xf32>
    %c0_9 = arith.constant 0 : index
    %c0_10 = arith.constant 0 : index
    %c0_11 = arith.constant 0 : index
    %16 = vector.load %arg4[%c0_9, %c0_10, %c0_11] : memref<1x1x128xf32, #tpu.memory_space<vmem>>, vector<1x1x128xf32>
    tpu.vector_store %arg4[%c0_9, %c0_10, %c0_11], %15 {strides = array<i32>} : memref<1x1x128xf32, #tpu.memory_space<vmem>>, vector<1x1x128xf32>,
    %17 = arith.mulf %10, %10 : vector<256x128xf32>
    %cst_12 = arith.constant dense<0.000000e+00> : vector<128xf32>
    %18 = vector.multi_reduction <add>, %17, %cst_12 [0] : vector<256x128xf32> to vector<128xf32>
    %19 = vector.shape_cast %18 : vector<128xf32> to vector<1x128xf32>
    %20 = vector.shape_cast %19 : vector<1x128xf32> to vector<1x1x128xf32>
    %c0_13 = arith.constant 0 : index
    %c0_14 = arith.constant 0 : index
    %c0_15 = arith.constant 0 : index
    %21 = vector.load %arg5[%c0_13, %c0_14, %c0_15] : memref<1x1x128xf32, #tpu.memory_space<vmem>>, vector<1x1x128xf32>
    tpu.vector_store %arg5[%c0_13, %c0_14, %c0_15], %20 {strides = array<i32>} : memref<1x1x128xf32, #tpu.memory_space<vmem>>, vector<1x1x128xf32>,
    return
  }
  func.func @transform_0(%arg0: i32) -> (i32, i32) {
    %c0_i32 = arith.constant 0 : i32
    %c0_i32_0 = arith.constant 0 : i32
    return %arg0, %c0_i32 : i32, i32
  }
  func.func @transform_1(%arg0: i32) -> (i32, i32) {
    %c0_i32 = arith.constant 0 : i32
    %c0_i32_0 = arith.constant 0 : i32
    %c0_i32_1 = arith.constant 0 : i32
    return %c0_i32, %c0_i32_0 : i32, i32
  }
  func.func @transform_2(%arg0: i32) -> (i32, i32) {
    %c0_i32 = arith.constant 0 : i32
    %c0_i32_0 = arith.constant 0 : i32
    return %arg0, %c0_i32 : i32, i32
  }
  func.func @transform_3(%arg0: i32) -> (i32, i32, i32) {
    %c0_i32 = arith.constant 0 : i32
    %c0_i32_0 = arith.constant 0 : i32
    %c0_i32_1 = arith.constant 0 : i32
    return %arg0, %c0_i32, %c0_i32_0 : i32, i32, i32
  }
  func.func @transform_4(%arg0: i32) -> (i32, i32, i32) {
    %c0_i32 = arith.constant 0 : i32
    %c0_i32_0 = arith.constant 0 : i32
    %c0_i32_1 = arith.constant 0 : i32
    return %arg0, %c0_i32, %c0_i32_0 : i32, i32, i32
  }
}

</mosaic_0001>

<bundles_post_ra>
// kernel: conv_gelu_bn.1
= control target key start
LH: loop header
LB: loop body
LE: loop exit
PB: predicated region body
PF: predicated region fallthrough
CT: control target
= control target key end

     0   :  { %s1517_s15 = smov 0   ;;  %s1746_s0 = inlined_call_operand.vmem [shape: bf16[512,128], index: 0, kind: input, shape index: {}]   ;;  %s1747_s1 = inlined_call_operand.vmem [shape: bf16[128,128], index: 1, kind: input, shape index: {}]   ;;  %s1748_s2 = inlined_call_operand.vmem [shape: bf16[512,128], index: 2, kind: output, shape index: {0}]   ;;  %s1749_s3 = inlined_call_operand.vmem [shape: f32[2,1,128], index: 3, kind: output, shape index: {1}]   ;;  %s1750_s4 = inlined_call_operand.vmem [shape: f32[2,1,128], index: 4, kind: output, shape index: {2}]  }
   0x1 LB: > { %s1523_s16 = sadd.s32 4294967295, %s1490_s15   ;;  %p1110_p0 = scmp.ge.s32.totalorder %s1490_s15, 1  ;;  %s1490_s15 = sphi %s1517_s15, %s15_s15  }
   0x2   : > { %p168_p1 = scmp.lt.s32.totalorder %s1490_s15, 3 }
   0x4   : > { %p169_p2 = pnand %p1110_p0, %p168_p1 }
   0x5   : > { %s1111_s19 = sshll.u32 (!%p169_p2), %s1523_s16, 5  ;;  %p212_p4 = scmp.lt.s32.totalorder (!%p169_p2), %s1523_s16, 1 }
   0x6   : > { %172 = sbr.rel (%p169_p2) target bundleno = 350 (0x15e), region = 28  ;;  %p201_p3 = scmp.lt.s32.totalorder (!%p169_p2), %s1111_s19, 63 }
   0xb   : > { %v1396_v0 = vld [vmem:[%s1747_s1 + $0x38] sm:$0xff]   ;;  %v1397_v1 = vld [vmem:[%s1747_s1 + $0x30] sm:$0xff]   ;;  %s1752_s19 = smov (!%p201_p3, %s1111_s19), 63  ;;  %v1398_v2 = vld [vmem:[%s1747_s1 + $0x28] sm:$0xff]   ;;  %s1754_s16 = smov (!%p212_p4, %s1523_s16), 1 }
   0xc   : > { %1324 = vmatprep.subr.bf16.mxu0 %v1396_v0  ;;  %1372 = vmatprep.subr.bf16.mxu1 %v1396_v0  ;;  %s1112_s24 = sshll.u32 %s1752_s19, 2  ;;  %v1399_v3 = vld [vmem:[%s1747_s1 + $0x20] sm:$0xff]   ;;  %v1400_v5 = vld [vmem:[%s1747_s1 + $0x18] sm:$0xff]   ;;  %v1401_v7 = vld [vmem:[%s1747_s1 + $0x10] sm:$0xff]   ;;  %s214_s19 = scalar_lea.vmem %s1749_s3, %s1754_s16 }
   0xd   : > { %1325 = vmatpush3.bf16.msra.mxu0 %v1396_v0  ;;  %1380 = vmatpush3.bf16.msra.mxu1 %v1396_v0  ;;  %s1545_s27 = scalar_lea.vmem %s1746_s0, %s1112_s24  ;;  %v1402_v8 = vld [vmem:[%s1747_s1 + $0x8] sm:$0xff]   ;;  %v1403_v9 = vld [vmem:[%s1747_s1] sm:$0xff]   ;;  %s1609_s14 = scalar_lea.vmem %s1748_s2, %s1112_s24 }
   0xe   : > { %1326 = vmatprep.subr.bf16.mxu0 %v1397_v1  ;;  %1373 = vmatprep.subr.bf16.mxu1 %v1397_v1  ;;  %v1404_v4 = vld [vmem:[%s1545_s27] sm:$0xff]   ;;  %v1405_v10 = vld [vmem:[%s1545_s27 + $0x8] sm:$0xff]   ;;  %v1406_v12 = vld [vmem:[%s1545_s27 + $0x10] sm:$0xff]   ;;  %s217_s22 = scalar_lea.vmem %s1750_s4, %s1754_s16 }
   0xf   : > { %1340 = vmatprep.mubr.bf16.mxu0 %v1404_v4  ;;  %v1408_v6 = vld [vmem:[%s1545_s27 + $0x40] sm:$0xff]   ;;  %v1409_v11 = vld [vmem:[%s1545_s27 + $0x48] sm:$0xff]   ;;  %v1412_v13 = vld [vmem:[%s1545_s27 + $0x50] sm:$0xff]  }
  0x10   : > { %1356 = vmatprep.mubr.bf16.mxu1 %v1408_v6  ;;  %v1407_v14 = vld [vmem:[%s1545_s27 + $0x18] sm:$0xff]   ;;  %v1410_v16 = vld [vmem:[%s1545_s27 + $0x20] sm:$0xff]   ;;  %v1411_v18 = vld [vmem:[%s1545_s27 + $0x28] sm:$0xff]  }
  0x11   : > { %1327 = vmatpush3.bf16.msra.mxu0 %v1397_v1  ;;  %1381 = vmatpush3.bf16.msra.mxu1 %v1397_v1  ;;  %v1413_v15 = vld [vmem:[%s1545_s27 + $0x58] sm:$0xff]   ;;  %v1416_v17 = vld [vmem:[%s1545_s27 + $0x60] sm:$0xff]   ;;  %v1417_v19 = vld [vmem:[%s1545_s27 + $0x68] sm:$0xff]  }
  0x12   : > { %1328 = vmatprep.subr.bf16.mxu0 %v1398_v2  ;;  %1374 = vmatprep.subr.bf16.mxu1 %v1398_v2  ;;  %v1414_v20 = vld [vmem:[%s1545_s27 + $0x30] sm:$0xff]   ;;  %v1415_v22 = vld [vmem:[%s1545_s27 + $0x38] sm:$0xff]  }
  0x13   : > { %v1418_v21 = vld [vmem:[%s1545_s27 + $0x70] sm:$0xff]   ;;  %v1419_v23 = vld [vmem:[%s1545_s27 + $0x78] sm:$0xff]  }
  0x15   : > { %1329 = vmatpush3.bf16.msra.mxu0 %v1398_v2  ;;  %1382 = vmatpush3.bf16.msra.mxu1 %v1398_v2 }
  0x16   : > { %1330 = vmatprep.subr.bf16.mxu0 %v1399_v3  ;;  %1375 = vmatprep.subr.bf16.mxu1 %v1399_v3 }
  0x19   : > { %1331 = vmatpush3.bf16.msra.mxu0 %v1399_v3  ;;  %1383 = vmatpush3.bf16.msra.mxu1 %v1399_v3 }
  0x1a   : > { %1332 = vmatprep.subr.bf16.mxu0 %v1400_v5  ;;  %1376 = vmatprep.subr.bf16.mxu1 %v1400_v5 }
  0x1d   : > { %1333 = vmatpush3.bf16.msra.mxu0 %v1400_v5  ;;  %1384 = vmatpush3.bf16.msra.mxu1 %v1400_v5 }
  0x1e   : > { %1334 = vmatprep.subr.bf16.mxu0 %v1401_v7  ;;  %1377 = vmatprep.subr.bf16.mxu1 %v1401_v7 }
  0x21   : > { %1335 = vmatpush3.bf16.msra.mxu0 %v1401_v7  ;;  %1385 = vmatpush3.bf16.msra.mxu1 %v1401_v7 }
  0x22   : > { %1336 = vmatprep.subr.bf16.mxu0 %v1402_v8  ;;  %1378 = vmatprep.subr.bf16.mxu1 %v1402_v8 }
  0x25   : > { %1337 = vmatpush3.bf16.msra.mxu0 %v1402_v8  ;;  %1386 = vmatpush3.bf16.msra.mxu1 %v1402_v8 }
  0x26   : > { %1338 = vmatprep.subr.bf16.mxu0 %v1403_v9  ;;  %1379 = vmatprep.subr.bf16.mxu1 %v1403_v9 }
  0x29   : > { %1339 = vmatpush3.bf16.msra.mxu0 %v1403_v9  ;;  %1387 = vmatpush3.bf16.msra.mxu1 %v1403_v9 }
  0x2c   : > { %1341 = vmatmul.mubr.bf16.vlgmr.msra.gmra.mxu0 %v1405_v10  ;;  %1357 = vmatmul.mubr.bf16.vlgmr.msra.gmra.mxu1 %v1409_v11 }
  0x2d   : > { %1344 = vmatprep.mubr.bf16.mxu0 %v1406_v12  ;;  %1360 = vmatprep.mubr.bf16.mxu1 %v1412_v13 }
  0x34   : > { %1345 = vmatmul.mubr.bf16.gmra.mxu0 %v1407_v14  ;;  %1361 = vmatmul.mubr.bf16.gmra.mxu1 %v1413_v15 }
  0x35   : > { %1348 = vmatprep.mubr.bf16.mxu0 %v1410_v16  ;;  %1364 = vmatprep.mubr.bf16.mxu1 %v1416_v17 }
  0x3c   : > { %1349 = vmatmul.mubr.bf16.gmra.mxu0 %v1411_v18  ;;  %1365 = vmatmul.mubr.bf16.gmra.mxu1 %v1417_v19 }
  0x3d   : > { %1352 = vmatprep.mubr.bf16.mxu0 %v1414_v20  ;;  %1368 = vmatprep.mubr.bf16.mxu1 %v1418_v21 }
  0x44   : > { %1353 = vmatmul.mubr.bf16.gmra.mxu0 %v1415_v22  ;;  %1369 = vmatmul.mubr.bf16.gmra.mxu1 %v1419_v23 }
  0xec   : > { %v1342_v24 = vpop.f32.mrf.mxu0  ;;  %v1358_v25 = vpop.f32.mrf.mxu1 }
  0xed   : > { %v606_v26 = vmul.f32 0.70710677, %v1342_v24  ;;  %v622_v27 = vmul.f32 0.70710677, %v1358_v25  ;;  %v574_v58 = vmul.f32 0.5, %v1342_v24  ;;  %v590_v60 = vmul.f32 0.5, %v1358_v25 }
  0xee   : > { %v445_v28 = vpop.f32.mrf.mxu0  ;;  %v509_v29 = vpop.f32.mrf.mxu1 }
  0xef   : > { %1420 = verf.f32 %v606_v26  ;;  %v604_v30 = vmul.f32 0.70710677, %v445_v28  ;;  %v620_v32 = vmul.f32 0.70710677, %v509_v29  ;;  %v572_v59 = vmul.f32 0.5, %v445_v28 }
  0xf0   : > { %v1343_v31 = vpop.f32.mrf.mxu0  ;;  %1422 = verf.f32 %v622_v27  ;;  %v1359_v33 = vpop.f32.mrf.mxu1  ;;  %v588_v5 = vmul.f32 0.5, %v509_v29 }
  0xf1   : > { %1424 = verf.f32 %v604_v30  ;;  %v607_v34 = vmul.f32 0.70710677, %v1343_v31  ;;  %v623_v36 = vmul.f32 0.70710677, %v1359_v33  ;;  %v575_v4 = vmul.f32 0.5, %v1343_v31 }
  0xf2   : > { %v448_v35 = vpop.f32.mrf.mxu0  ;;  %1426 = verf.f32 %v620_v32  ;;  %v512_v37 = vpop.f32.mrf.mxu1  ;;  %v591_v6 = vmul.f32 0.5, %v1359_v33 }
  0xf3   : > { %1428 = verf.f32 %v607_v34  ;;  %v605_v38 = vmul.f32 0.70710677, %v448_v35  ;;  %v621_v40 = vmul.f32 0.70710677, %v512_v37  ;;  %v573_v9 = vmul.f32 0.5, %v448_v35 }
  0xf4   : > { %v1346_v39 = vpop.f32.mrf.mxu0  ;;  %1430 = verf.f32 %v623_v36  ;;  %v1362_v41 = vpop.f32.mrf.mxu1  ;;  %v589_v11 = vmul.f32 0.5, %v512_v37 }
  0xf5   : > { %1432 = verf.f32 %v605_v38  ;;  %v610_v42 = vmul.f32 0.70710677, %v1346_v39  ;;  %v626_v44 = vmul.f32 0.70710677, %v1362_v41  ;;  %v578_v15 = vmul.f32 0.5, %v1346_v39 }
  0xf6   : > { %v461_v43 = vpop.f32.mrf.mxu0  ;;  %1434 = verf.f32 %v621_v40  ;;  %v1578_v45 = vpop.f32.mrf.mxu1  ;;  %v594_v17 = vmul.f32 0.5, %v1362_v41 }
  0xf7   : > { %1436 = verf.f32 %v610_v42  ;;  %v608_v46 = vmul.f32 0.70710677, %v461_v43  ;;  %v624_v51 = vmul.f32 0.70710677, %v1578_v45  ;;  %v576_v29 = vmul.f32 0.5, %v461_v43 }
  0xf8   : > { %v1347_v47 = vpop.f32.mrf.mxu0  ;;  %1438 = verf.f32 %v626_v44  ;;  %v1580_v48 = vpop.f32.mrf.mxu1 }
  0xf9   : > { %1440 = verf.f32 %v608_v46  ;;  %v611_v49 = vmul.f32 0.70710677, %v1347_v47  ;;  %v627_v52 = vmul.f32 0.70710677, %v1580_v48  ;;  %v579_v36 = vmul.f32 0.5, %v1347_v47 }
  0xfa   : > { %v1582_v50 = vpop.f32.mrf.mxu0  ;;  %v1587_v54 = vpop.f32.mrf.mxu1 }
  0xfb   : > { %1442 = verf.f32 %v611_v49  ;;  %v609_v53 = vmul.f32 0.70710677, %v1582_v50  ;;  %v625_v1 = vmul.f32 0.70710677, %v1587_v54 }
  0xfc   : > { %v1421_v55 = vpop.eup %1420  ;;  %v1589_v56 = vpop.f32.mrf.mxu0  ;;  %1444 = verf.f32 %v627_v52 }
  0xfd   : > { %v1423_v57 = vpop.eup %1422  ;;  %1446 = verf.f32 %v609_v53  ;;  %v670_v62 = vadd.f32 1.0, %v1421_v55  ;;  %v1594_v7 = vpop.f32.mrf.mxu1  ;;  %v614_v16 = vmul.f32 0.70710677, %v1589_v56 }
  0xfe   : > { %v1425_v61 = vpop.eup %1424  ;;  %v686_v63 = vadd.f32 1.0, %v1423_v57  ;;  %v1591_v0 = vpop.f32.mrf.mxu0  ;;  %1448 = verf.f32 %v624_v51  ;;  %v595_v57 = vmul.f32 0.5, %v1580_v48 }
  0xff   : > { %v1427_v2 = vpop.eup %1426  ;;  %v668_v3 = vadd.f32 1.0, %v1425_v61  ;;  %v612_v12 = vmul.f32 0.70710677, %v1591_v0  ;;  %v702_v20 = vmul.f32 %v670_v62, %v574_v58  ;;  %1450 = verf.f32 %v625_v1  ;;  %v1602_v27 = vpop.f32.mrf.mxu1 }
 0x100   : > { %v1429_v8 = vpop.eup %1428  ;;  %v684_v10 = vadd.f32 1.0, %v1427_v2  ;;  %v1598_v18 = vpop.f32.mrf.mxu0  ;;  %v1600_v21 = vmul.f32 %v686_v63, %v590_v60 }
 0x101   : > { %v1431_v13 = vpop.eup %1430  ;;  %v671_v14 = vadd.f32 1.0, %v1429_v8  ;;  %v700_v24 = vmul.f32 %v668_v3, %v572_v59  ;;  %1452 = verf.f32 %v612_v12  ;;  %v615_v42 = vmul.f32 0.70710677, %v1598_v18  ;;  %v1623_v47 = vpop.f32.mrf.mxu1 }
 0x102   : > { %v1433_v19 = vpop.eup %1432  ;;  %v687_v22 = vadd.f32 1.0, %v1431_v13  ;;  %v1611_v30 = vmul.f32 %v684_v10, %v588_v5  ;;  %1454 = verf.f32 %v614_v16  ;;  %v1615_v37 = vpop.f32.mrf.mxu0  ;;  %v932_v59 = vmul.f32 %v702_v20, %v702_v20 }
 0x103   : > { %v1435_v23 = vpop.eup %1434  ;;  %v703_v25 = vmul.f32 %v671_v14, %v575_v4  ;;  %v669_v26 = vadd.f32 1.0, %v1433_v19  ;;  %v930_v43 = vmul.f32 %v700_v24, %v700_v24  ;;  %1456 = verf.f32 %v615_v42  ;;  %v1633_v48 = vpop.f32.mrf.mxu1 }
 0x104   : > { %v1437_v28 = vpop.eup %1436  ;;  %v1613_v31 = vmul.f32 %v687_v22, %v591_v6  ;;  %v685_v32 = vadd.f32 1.0, %v1435_v23  ;;  %v1630_v63 = vpop.f32.mrf.mxu0  ;;  %v613_v13 = vmul.f32 0.70710677, %v1615_v37 }
 0x105   : > { %v1439_v33 = vpop.eup %1438  ;;  %v1213_v34 = vpack.c.bf16 %v703_v25, %v702_v20  ;;  %v701_v35 = vmul.f32 %v669_v26, %v573_v9  ;;  %v674_v39 = vadd.f32 1.0, %v1437_v28  ;;  %v933_v2 = vmul.f32 %v703_v25, %v703_v25 }
 0x106   : > { %v1441_v38 = vpop.eup %1440  ;;  %v1253_v40 = vpack.c.bf16 %v1613_v31, %v1600_v21  ;;  %v1619_v41 = vmul.f32 %v685_v32, %v589_v11  ;;  %v690_v55 = vadd.f32 1.0, %v1439_v33  ;;  %v577_v11 = vmul.f32 0.5, %v1582_v50  ;;  %v1639_v22 = vpop.f32.mrf.mxu0 }
 0x107   : > { %1285 = vst [vmem:[%s1609_s14 + $0x8] sm:$0xff] %v1213_v34   ;;  %v1208_v44 = vpack.c.bf16 %v701_v35, %v700_v24  ;;  %v892_v46 = vadd.f32 %v701_v35, %v700_v24  ;;  %v931_v49 = vmul.f32 %v701_v35, %v701_v35  ;;  %v672_v52 = vadd.f32 1.0, %v1441_v38  ;;  %v1647_v32 = vpop.f32.mrf.mxu1 }
 0x108   : > { %v1443_v51 = vpop.eup %1442  ;;  %1293 = vst [vmem:[%s1609_s14 + $0x48] sm:$0xff] %v1253_v40   ;;  %v1248_v53 = vpack.c.bf16 %v1619_v41, %v1611_v30  ;;  %v706_v3 = vmul.f32 %v674_v39, %v578_v15  ;;  %v1636_v12 = vmul.f32 %v690_v55, %v594_v17  ;;  %v592_v24 = vmul.f32 0.5, %v1578_v45  ;;  %v1652_v39 = vpop.f32.mrf.mxu0 }
 0x109   : > { %v1445_v58 = vpop.eup %1444  ;;  %1209 = vst [vmem:[%s1609_s14] sm:$0xff] %v1208_v44   ;;  %v893_v60 = vadd.f32 %v892_v46, %v702_v20  ;;  %v962_v61 = vadd.f32 %v931_v49, %v930_v43  ;;  %v675_v62 = vadd.f32 1.0, %v1443_v51  ;;  %v704_v4 = vmul.f32 %v672_v52, %v576_v29  ;;  %v1659_v49 = vpop.f32.mrf.mxu1 }
 0x10a   : > { %v1447_v1 = vpop.eup %1446  ;;  %1292 = vst [vmem:[%s1609_s14 + $0x40] sm:$0xff] %v1248_v53   ;;  %v691_v14 = vadd.f32 1.0, %v1445_v58  ;;  %1458 = verf.f32 %v613_v13  ;;  %v618_v17 = vmul.f32 0.70710677, %v1630_v63  ;;  %v593_v29 = vmul.f32 0.5, %v1587_v54 }
 0x10b   : > { %v1449_v5 = vpop.eup %1448  ;;  %v963_v6 = vadd.f32 %v962_v61, %v932_v59  ;;  %v894_v8 = vadd.f32 %v893_v60, %v703_v25  ;;  %v707_v9 = vmul.f32 %v675_v62, %v579_v36  ;;  %v673_v10 = vadd.f32 1.0, %v1447_v1  ;;  %v1665_v59 = vpop.f32.mrf.mxu0 }
 0x10c   : > { %v934_v15 = vmul.f32 %v704_v4, %v704_v4  ;;  %v688_v25 = vadd.f32 1.0, %v1449_v5  ;;  %v1451_v26 = vpop.eup %1450  ;;  %v1643_v50 = vmul.f32 %v691_v14, %v595_v57  ;;  %v630_v45 = vmul.f32 0.70710677, %v1594_v7 }
 0x10d   : > { %v895_v16 = vadd.f32 %v894_v8, %v704_v4  ;;  %v964_v19 = vadd.f32 %v963_v6, %v933_v2  ;;  %v1223_v20 = vpack.c.bf16 %v707_v9, %v706_v3  ;;  %v705_v23 = vmul.f32 %v673_v10, %v577_v11 }
 0x10e   : > { %v1453_v33 = vpop.eup %1452  ;;  %v1263_v38 = vpack.c.bf16 %v1643_v50, %v1636_v12  ;;  %v1655_v43 = vmul.f32 %v688_v25, %v592_v24  ;;  %v689_v44 = vadd.f32 1.0, %v1451_v26  ;;  %1460 = verf.f32 %v618_v17 }
 0x10f   : > { %v965_v28 = vadd.f32 %v964_v19, %v934_v15  ;;  %1287 = vst [vmem:[%s1609_s14 + $0x18] sm:$0xff] %v1223_v20   ;;  %v1218_v34 = vpack.c.bf16 %v705_v23, %v704_v4  ;;  %v896_v35 = vadd.f32 %v895_v16, %v705_v23  ;;  %v935_v36 = vmul.f32 %v705_v23, %v705_v23  ;;  %v1455_v40 = vpop.eup %1454 }
 0x110   : > { %v676_v54 = vadd.f32 1.0, %v1453_v33  ;;  %1295 = vst [vmem:[%s1609_s14 + $0x58] sm:$0xff] %v1263_v38   ;;  %v616_v46 = vmul.f32 0.70710677, %v1639_v22  ;;  %v936_v51 = vmul.f32 %v706_v3, %v706_v3  ;;  %v1661_v53 = vmul.f32 %v689_v44, %v593_v29  ;;  %v1457_v1 = vpop.eup %1456 }
 0x111   : > { %1286 = vst [vmem:[%s1609_s14 + $0x10] sm:$0xff] %v1218_v34   ;;  %v966_v42 = vadd.f32 %v965_v28, %v935_v36  ;;  %v897_v52 = vadd.f32 %v896_v35, %v706_v3  ;;  %1462 = verf.f32 %v630_v45  ;;  %v678_v55 = vadd.f32 1.0, %v1455_v40 }
 0x112   : > { %v580_v57 = vmul.f32 0.5, %v1591_v0  ;;  %1464 = verf.f32 %v616_v46  ;;  %v619_v58 = vmul.f32 0.70710677, %v1652_v39  ;;  %v582_v61 = vmul.f32 0.5, %v1589_v56  ;;  %v1672_v0 = vpop.f32.mrf.mxu1 }
 0x113   : > { %v967_v60 = vadd.f32 %v966_v42, %v936_v51  ;;  %v1258_v62 = vpack.c.bf16 %v1661_v53, %v1655_v43  ;;  %v583_v3 = vmul.f32 0.5, %v1598_v18  ;;  %v628_v4 = vmul.f32 0.70710677, %v1602_v27 }
 0x114   : > { %v708_v2 = vmul.f32 %v676_v54, %v580_v57  ;;  %1466 = verf.f32 %v619_v58  ;;  %v937_v5 = vmul.f32 %v707_v9, %v707_v9  ;;  %v898_v6 = vadd.f32 %v897_v52, %v707_v9  ;;  %v1681_v23 = vpop.f32.mrf.mxu1 }
 0x115   : > { %v679_v8 = vadd.f32 1.0, %v1457_v1  ;;  %1294 = vst [vmem:[%s1609_s14 + $0x50] sm:$0xff] %v1258_v62   ;;  %v617_v10 = vmul.f32 0.70710677, %v1665_v59  ;;  %v710_v11 = vmul.f32 %v678_v55, %v582_v61  ;;  %v581_v56 = vmul.f32 0.5, %v1615_v37 }
 0x116   : > { %1468 = verf.f32 %v628_v4  ;;  %v631_v13 = vmul.f32 0.70710677, %v1623_v47  ;;  %v968_v14 = vadd.f32 %v967_v60, %v937_v5  ;;  %v629_v18 = vmul.f32 0.70710677, %v1633_v48 }
 0x117   : > { %v711_v16 = vmul.f32 %v679_v8, %v583_v3  ;;  %1470 = verf.f32 %v617_v10  ;;  %v1459_v15 = vpop.eup %1458  ;;  %v938_v19 = vmul.f32 %v708_v2, %v708_v2  ;;  %v634_v9 = vmul.f32 0.70710677, %v1647_v32 }
 0x118   : > { %1472 = verf.f32 %v631_v13  ;;  %v632_v20 = vmul.f32 0.70710677, %v1659_v49  ;;  %v899_v24 = vadd.f32 %v898_v6, %v708_v2  ;;  %v677_v25 = vadd.f32 1.0, %v1459_v15 }
 0x119   : > { %v1233_v37 = vpack.c.bf16 %v711_v16, %v710_v11  ;;  %1474 = verf.f32 %v629_v18  ;;  %v635_v26 = vmul.f32 0.70710677, %v1672_v0  ;;  %v969_v28 = vadd.f32 %v968_v14, %v938_v19 }
 0x11a   : > { %1476 = verf.f32 %v634_v9  ;;  %v709_v17 = vmul.f32 %v677_v25, %v581_v56  ;;  %v633_v29 = vmul.f32 0.70710677, %v1681_v23  ;;  %v940_v40 = vmul.f32 %v710_v11, %v710_v11 }
 0x11b   : > { %1289 = vst [vmem:[%s1609_s14 + $0x28] sm:$0xff] %v1233_v37   ;;  %1478 = verf.f32 %v632_v20  ;;  %v1461_v33 = vpop.eup %1460  ;;  %v584_v46 = vmul.f32 0.5, %v1639_v22  ;;  %v598_v52 = vmul.f32 0.5, %v1594_v7  ;;  %v941_v57 = vmul.f32 %v711_v16, %v711_v16 }
 0x11c   : > { %1480 = verf.f32 %v635_v26  ;;  %v1228_v34 = vpack.c.bf16 %v709_v17, %v708_v2  ;;  %v900_v35 = vadd.f32 %v899_v24, %v709_v17  ;;  %v939_v36 = vmul.f32 %v709_v17, %v709_v17 }
 0x11d   : > { %1482 = verf.f32 %v633_v29  ;;  %v682_v54 = vadd.f32 1.0, %v1461_v33  ;;  %v586_v60 = vmul.f32 0.5, %v1630_v63  ;;  %v587_v2 = vmul.f32 0.5, %v1652_v39 }
 0x11e   : > { %v1463_v45 = vpop.eup %1462  ;;  %1288 = vst [vmem:[%s1609_s14 + $0x20] sm:$0xff] %v1228_v34   ;;  %v901_v42 = vadd.f32 %v900_v35, %v710_v11  ;;  %v970_v44 = vadd.f32 %v969_v28, %v939_v36  ;;  %v596_v6 = vmul.f32 0.5, %v1602_v27  ;;  %v585_v7 = vmul.f32 0.5, %v1665_v59 }
 0x11f   : > { %v1465_v38 = vpop.eup %1464  ;;  %v694_v1 = vadd.f32 1.0, %v1463_v45  ;;  %v714_v22 = vmul.f32 %v682_v54, %v586_v60  ;;  %v597_v19 = vmul.f32 0.5, %v1633_v48  ;;  %v602_v27 = vmul.f32 0.5, %v1647_v32 }
 0x120   : > { %v680_v51 = vadd.f32 1.0, %v1465_v38  ;;  %v971_v58 = vadd.f32 %v970_v44, %v940_v40  ;;  %v902_v61 = vadd.f32 %v901_v42, %v711_v16  ;;  %v599_v16 = vmul.f32 0.5, %v1623_v47 }
 0x121   : > { %v1467_v55 = vpop.eup %1466  ;;  %v1694_v39 = vmul.f32 %v694_v1, %v598_v52  ;;  %v600_v47 = vmul.f32 0.5, %v1659_v49  ;;  %v603_v17 = vmul.f32 0.5, %v1672_v0  ;;  %v944_v36 = vmul.f32 %v714_v22, %v714_v22 }
 0x122   : > { %v712_v62 = vmul.f32 %v680_v51, %v584_v46  ;;  %v683_v3 = vadd.f32 1.0, %v1467_v55  ;;  %v972_v5 = vadd.f32 %v971_v58, %v941_v57  ;;  %v601_v51 = vmul.f32 0.5, %v1681_v23 }
 0x123   : > { %v1469_v4 = vpop.eup %1468  ;;  %v947_v23 = vmul.f32 %v1619_v41, %v1619_v41 }
 0x124   : > { %v1471_v8 = vpop.eup %1470  ;;  %v715_v10 = vmul.f32 %v683_v3, %v587_v2  ;;  %v692_v11 = vadd.f32 1.0, %v1469_v4  ;;  %v903_v13 = vadd.f32 %v902_v61, %v712_v62  ;;  %v942_v63 = vmul.f32 %v712_v62, %v712_v62 }
 0x125   : > { %v1473_v56 = vpop.eup %1472  ;;  %v681_v14 = vadd.f32 1.0, %v1471_v8  ;;  %v946_v61 = vmul.f32 %v1611_v30, %v1611_v30  ;;  %v948_v8 = vmul.f32 %v1600_v21, %v1600_v21 }
 0x126   : > { %v1475_v18 = vpop.eup %1474  ;;  %v1243_v15 = vpack.c.bf16 %v715_v10, %v714_v22  ;;  %v973_v20 = vadd.f32 %v972_v5, %v942_v63  ;;  %v695_v37 = vadd.f32 1.0, %v1473_v56  ;;  %v724_v26 = vmul.f32 %v692_v11, %v596_v6 }
 0x127   : > { %v1477_v9 = vpop.eup %1476  ;;  %v713_v24 = vmul.f32 %v681_v14, %v585_v7  ;;  %v693_v59 = vadd.f32 1.0, %v1475_v18  ;;  %v945_v46 = vmul.f32 %v715_v10, %v715_v10  ;;  %v950_v56 = vmul.f32 %v1655_v43, %v1655_v43 }
 0x128   : > { %v1479_v25 = vpop.eup %1478  ;;  %1291 = vst [vmem:[%s1609_s14 + $0x38] sm:$0xff] %v1243_v15   ;;  %v698_v28 = vadd.f32 1.0, %v1477_v9  ;;  %v727_v35 = vmul.f32 %v695_v37, %v599_v16  ;;  %v951_v63 = vmul.f32 %v1661_v53, %v1661_v53  ;;  %v952_v16 = vmul.f32 %v1636_v12, %v1636_v12 }
 0x129   : > { %v1481_v29 = vpop.eup %1480  ;;  %v1238_v33 = vpack.c.bf16 %v713_v24, %v712_v62  ;;  %v904_v34 = vadd.f32 %v903_v13, %v713_v24  ;;  %v943_v48 = vmul.f32 %v713_v24, %v713_v24  ;;  %v725_v45 = vmul.f32 %v693_v59, %v597_v19 }
 0x12a   : > { %v1483_v32 = vpop.eup %1482  ;;  %v696_v38 = vadd.f32 1.0, %v1479_v25  ;;  %v699_v40 = vadd.f32 1.0, %v1481_v29  ;;  %v1273_v54 = vpack.c.bf16 %v727_v35, %v1694_v39  ;;  %v730_v49 = vmul.f32 %v698_v28, %v602_v27 }
 0x12b   : > { %1290 = vst [vmem:[%s1609_s14 + $0x30] sm:$0xff] %v1238_v33   ;;  %v905_v42 = vadd.f32 %v904_v34, %v714_v22  ;;  %v974_v44 = vadd.f32 %v973_v20, %v943_v48  ;;  %v1268_v0 = vpack.c.bf16 %v725_v45, %v724_v26  ;;  %v697_v58 = vadd.f32 1.0, %v1483_v32 }
 0x12c   : > { %1297 = vst [vmem:[%s1609_s14 + $0x68] sm:$0xff] %v1273_v54   ;;  %v731_v57 = vmul.f32 %v699_v40, %v603_v17  ;;  %v728_v60 = vmul.f32 %v696_v38, %v600_v47  ;;  %v954_v9 = vmul.f32 %v724_v26, %v724_v26  ;;  %v955_v37 = vmul.f32 %v725_v45, %v725_v45 }
 0x12d   : > { %v906_v52 = vadd.f32 %v905_v42, %v715_v10  ;;  %v975_v55 = vadd.f32 %v974_v44, %v944_v36  ;;  %1296 = vst [vmem:[%s1609_s14 + $0x60] sm:$0xff] %v1268_v0   ;;  %v729_v3 = vmul.f32 %v697_v58, %v601_v51  ;;  %v960_v32 = vmul.f32 %v730_v49, %v730_v49 }
 0x12e   : > { %v1283_v2 = vpack.c.bf16 %v731_v57, %v730_v49  ;;  %v958_v33 = vmul.f32 %v728_v60, %v728_v60  ;;  %v961_v38 = vmul.f32 %v731_v57, %v731_v57 }
 0x12f   : > { %v907_v62 = vadd.f32 %v906_v52, %v1611_v30  ;;  %v976_v1 = vadd.f32 %v975_v55, %v945_v46  ;;  %v1278_v6 = vpack.c.bf16 %v729_v3, %v728_v60  ;;  %v949_v30 = vmul.f32 %v1613_v31, %v1613_v31 }
 0x130   : > { %1299 = vst [vmem:[%s1609_s14 + $0x78] sm:$0xff] %v1283_v2   ;;  %v959_v48 = vmul.f32 %v729_v3, %v729_v3 }
 0x131   : > { %v908_v4 = vadd.f32 %v907_v62, %v1619_v41  ;;  %v977_v5 = vadd.f32 %v976_v1, %v946_v61  ;;  %1298 = vst [vmem:[%s1609_s14 + $0x70] sm:$0xff] %v1278_v6  }
 0x133   : > { %v909_v22 = vadd.f32 %v908_v4, %v1600_v21  ;;  %v978_v10 = vadd.f32 %v977_v5, %v947_v23 }
 0x135   : > { %v910_v11 = vadd.f32 %v909_v22, %v1613_v31  ;;  %v979_v7 = vadd.f32 %v978_v10, %v948_v8  ;;  %v953_v31 = vmul.f32 %v1643_v50, %v1643_v50 }
 0x137   : > { %v980_v41 = vadd.f32 %v979_v7, %v949_v30  ;;  %v911_v13 = vadd.f32 %v910_v11, %v1655_v43 }
 0x139   : > { %v912_v14 = vadd.f32 %v911_v13, %v1661_v53  ;;  %v981_v21 = vadd.f32 %v980_v41, %v950_v56  ;;  %v956_v53 = vmul.f32 %v1694_v39, %v1694_v39 }
 0x13b   : > { %v913_v18 = vadd.f32 %v912_v14, %v1636_v12  ;;  %v982_v15 = vadd.f32 %v981_v21, %v951_v63  ;;  %v957_v12 = vmul.f32 %v727_v35, %v727_v35 }
 0x13d   : > { %v914_v19 = vadd.f32 %v913_v18, %v1643_v50  ;;  %v983_v27 = vadd.f32 %v982_v15, %v952_v16 }
 0x13f   : > { %v915_v43 = vadd.f32 %v914_v19, %v724_v26  ;;  %v984_v20 = vadd.f32 %v983_v27, %v953_v31 }
 0x141   : > { %v916_v24 = vadd.f32 %v915_v43, %v725_v45  ;;  %v985_v59 = vadd.f32 %v984_v20, %v954_v9 }
 0x143   : > { %v917_v25 = vadd.f32 %v916_v24, %v1694_v39  ;;  %v986_v28 = vadd.f32 %v985_v59, %v955_v37 }
 0x145   : > { %v987_v47 = vadd.f32 %v986_v28, %v956_v53  ;;  %v918_v17 = vadd.f32 %v917_v25, %v727_v35 }
 0x147   : > { %v919_v29 = vadd.f32 %v918_v17, %v728_v60  ;;  %v988_v50 = vadd.f32 %v987_v47, %v957_v12 }
 0x149   : > { %v989_v34 = vadd.f32 %v988_v50, %v958_v33  ;;  %v920_v26 = vadd.f32 %v919_v29, %v729_v3 }
 0x14b   : > { %v921_v36 = vadd.f32 %v920_v26, %v730_v49  ;;  %v990_v45 = vadd.f32 %v989_v34, %v959_v48 }
 0x14d   : > { %v922_v40 = vadd.f32 %v921_v36, %v731_v57  ;;  %v991_v42 = vadd.f32 %v990_v45, %v960_v32 }
 0x14f   : > { %v923_v44 = vrot.slane %v922_v40, 4  ;;  %v992_v39 = vadd.f32 %v991_v42, %v961_v38 }
 0x151   : > { %v924_v54 = vadd.f32 %v923_v44, %v922_v40  ;;  %v993_v46 = vrot.slane %v992_v39, 4 }
 0x153   : > { %v925_v0 = vrot.slane %v924_v54, 2  ;;  %v994_v35 = vadd.f32 %v993_v46, %v992_v39 }
 0x155   : > { %v926_v51 = vadd.f32 %v925_v0, %v924_v54  ;;  %v995_v52 = vrot.slane %v994_v35, 2 }
 0x157   : > { %v927_v55 = vrot.slane %v926_v51, 1  ;;  %v996_v58 = vadd.f32 %v995_v52, %v994_v35 }
 0x159   : > { %v928_v49 = vadd.f32 %v927_v55, %v926_v51  ;;  %v997_v60 = vrot.slane %v996_v58, 1 }
 0x15b   : > { %929 = vst [vmem:[%s214_s19] sm:$0x1] %v928_v49  ;;  %v998_v57 = vadd.f32 %v997_v60, %v996_v58 }
 0x15d   : > { %999 = vst [vmem:[%s217_s22] sm:$0x1] %v998_v57 }
 0x15e PF: > { %s15_s15 = sadd.s32 1, %s1490_s15  }
 0x15f   : > { %p12_p5 = scmp.ge.s32.totalorder %s15_s15, 4  }
 0x161   :  { %14 = sbr.rel (!%p12_p5) target bundleno = 1 (0x1), region = 82 }

</bundles_post_ra>
